<compile_context>
chip_gen: v7x
topology: tpu7x:2x2x1
jax: 0.10.0
libtpu: 0.0.40
codegen_flags: <defaults>
</compile_context>

<pallas_src>
import jax
import jax.numpy as jnp
from jax.experimental import pallas as pl
from jax.experimental.pallas import tpu as pltpu


# ----------------------------------------------------------------------------------------
# Kernel
# ----------------------------------------------------------------------------------------
def _fused_upconv_kernel(x_ref, e_ref, w_ref, o_ref):
    """One (batch, row-block) grid step.

    x_ref: (1, Cin, TH, W)           NCHW input rows (consumed in place, no glue transpose)
    e_ref: (W, Kh*W*Kw)              0/1 lane-expansion matrix (VMEM-resident)
    w_ref: (Cin, Cout, 1, Kh*W*Kw)   pre-expanded weights (VMEM-resident)
    o_ref: (1, Cout, TH, Kh*W*Kw)    output rows; lane axis is already the pixel-shuffled
                                     (kh, w, kw) order, so NCHW is a free reshape outside.
    """
    e = e_ref[...]
    cin = x_ref.shape[1]
    acc = None
    # Cin is tiny for this ablation block, so an unrolled broadcast-MAC chain on the VPU is
    # cheaper than feeding the MXU with a depth-4 contraction.  Per the review, no further
    # VPU micro-optimisation is attempted: the kernel is HBM-store-bound.
    for ci in range(cin):
        x_ci = x_ref[0, ci].astype(jnp.float32)                     # (TH, W)
        # Exact lane expansion (th, w) -> (th, (kh, w, kw)) via a 0/1 matmul: each output
        # lane receives exactly one input value, so the result is exact in f32.
        xe = jnp.dot(x_ci, e, preferred_element_type=jnp.float32)   # (TH, KWK)
        term = w_ref[ci].astype(jnp.float32) * xe[None, :, :]       # (Cout, TH, KWK)
        acc = term if acc is None else acc + term
    o_ref[0] = acc.astype(o_ref.dtype)


# ----------------------------------------------------------------------------------------
# Tiling / budget helpers
# ----------------------------------------------------------------------------------------
def _round_up(x, m):
    return ((x + m - 1) // m) * m


def _vmem_budget_and_limit():
    """Generation-aware VMEM working budget + scoped-VMEM limit.

    v5e/v6e (128 MiB physical): ~24 MiB working budget; v7x (64 MiB per TensorCore):
    ~16 MiB.  The scoped limit is raised explicitly but kept well under physical capacity.
    """
    try:
        cap = getattr(pltpu.get_tpu_info(), "vmem_capacity_bytes", None)
    except Exception:
        cap = None
    if not cap:
        cap = 64 << 20  # if unknown, assume the smallest (v7x per-core) capacity
    budget = int(min(24 << 20, cap // 4))
    limit = int(min(cap // 2, 64 << 20))
    return budget, limit


def _pick_row_tile(n_batch, H, block_bytes_fn, vmem_budget):
    """Largest legal row tile (multiple of 8, or the full H) that fits the VMEM budget,
    then prefer >= 4 total grid steps (>= 2 per v7x TensorCore, and some pipelining on
    single-core chips) as long as that only steps down to the next legal tile size."""
    cands = [d for d in range(H, 0, -1) if H % d == 0 and (d % 8 == 0 or d == H)]
    fitting = [d for d in cands if block_bytes_fn(d) <= vmem_budget] or [cands[-1]]
    th = fitting[0]
    for d in fitting:
        th = d
        if n_batch * (H // d) >= 4:
            break
    return th


# ----------------------------------------------------------------------------------------
# Wrapper (== ModifiedUnetrPrUpBlock.forward)
# ----------------------------------------------------------------------------------------
def transp_conv_init_pallas(x, weight, stride=None):
    """ConvTranspose2d with kernel_size == stride, padding=0, no bias.  NCHW in / NCHW out.

    x:      (N, Cin, H, W)
    weight: (Cin, Cout, Kh, Kw)    (PyTorch ConvTranspose2d weight layout)
    stride: optional; must equal (Kh, Kw).  ModifiedUnetrPrUpBlock always sets
            upsample_stride = upsample_kernel_size; the non-overlap decomposition used here
            relies on it, so a mismatch fails loudly instead of computing the wrong conv.
    returns (N, Cout, H*Kh, W*Kw)
    """
    N, Cin, H, W = x.shape
    cin_w, Cout, Kh, Kw = weight.shape
    assert Cin == cin_w, "weight in_channels mismatch"
    if stride is not None:
        s = (stride, stride) if isinstance(stride, int) else tuple(stride)
        assert s == (Kh, Kw), (
            f"transp_conv_init_pallas requires stride == kernel_size, got stride={s}, "
            f"kernel={(Kh, Kw)}")

    KWK = Kh * W * Kw  # lanes of one output "h" row group: (kh, w, kw) flattened

    # --- tiny trace-time weight-side preprocessing (no activation-sized HBM traffic) ------
    # 0/1 expansion matrix: column u = kh*W*Kw + w*Kw + kw selects input lane w.
    u = jnp.arange(KWK, dtype=jnp.int32)
    e_mat = ((u[None, :] // Kw) % W ==
             jnp.arange(W, dtype=jnp.int32)[:, None]).astype(jnp.float32)        # (W, KWK)
    # Pre-expanded weights: wexp[ci, co, 0, kh*W*Kw + w*Kw + kw] = weight[ci, co, kh, kw].
    wexp = jnp.broadcast_to(
        weight.astype(jnp.float32)[:, :, :, None, :], (Cin, Cout, Kh, W, Kw)
    ).reshape(Cin, Cout, 1, KWK)

    # --- row-tile selection with padding / double-buffer / accumulator accounting --------
    itemsize = x.dtype.itemsize
    budget, vmem_limit = _vmem_budget_and_limit()

    def _block_bytes(th):
        th_p = _round_up(th, 8)
        x_blk = Cin * th_p * _round_up(W, 128) * itemsize          # input tile (lane-padded)
        o_blk = Cout * th_p * _round_up(KWK, 128) * itemsize       # output tile
        acc = Cout * th_p * _round_up(KWK, 128) * 4                # in-kernel f32 accumulator
        resident = (_round_up(W, 8) * _round_up(KWK, 128)          # e_mat
                    + Cin * Cout * 8 * _round_up(KWK, 128)) * 4    # wexp
        return 2 * x_blk + 2 * o_blk + acc + 2 * resident

    th = _pick_row_tile(N, H, _block_bytes, budget)
    grid = (N, H // th)

    # Output is produced directly in the free-reshape view (N, Cout, H, Kh*W*Kw):
    # every block is a set of full, contiguous NCHW rows -> dense DMA, no post-transpose.
    y5 = pl.pallas_call(
        _fused_upconv_kernel,
        out_shape=jax.ShapeDtypeStruct((N, Cout, H, KWK), x.dtype),
        grid_spec=pltpu.PrefetchScalarGridSpec(
            num_scalar_prefetch=0,
            grid=grid,
            in_specs=[
                pl.BlockSpec((1, Cin, th, W), lambda n, i: (n, 0, i, 0)),
                pl.BlockSpec((W, KWK), lambda n, i: (0, 0)),                 # resident
                pl.BlockSpec((Cin, Cout, 1, KWK), lambda n, i: (0, 0, 0, 0)),  # resident
            ],
            out_specs=pl.BlockSpec((1, Cout, th, KWK), lambda n, i: (n, 0, i, 0)),
        ),
        compiler_params=pltpu.CompilerParams(
            dimension_semantics=("parallel", "parallel"),
            vmem_limit_bytes=vmem_limit,
        ),
    )(x, e_mat, wexp)

    # Free reshape (same element order): (N, Cout, H, Kh*W*Kw) -> (N, Cout, H*Kh, W*Kw).
    return y5.reshape(N, Cout, H * Kh, W * Kw)


def modified_unetr_pr_up_block_forward(x, weight, upsample_kernel_size):
    """forward(x) of ModifiedUnetrPrUpBlock == transp_conv_init(x) only."""
    return transp_conv_init_pallas(x, weight, stride=upsample_kernel_size)


def _reference(x, weight):
    # Direct einsum reference of the same transposed conv (stride == kernel, no overlap).
    N, Cin, H, W = x.shape
    _, Cout, Kh, Kw = weight.shape
    y = jnp.einsum("nihw,iojk->nohjwk", x, weight)
    return y.reshape(N, Cout, H * Kh, W * Kw)


if __name__ == "__main__":
    key = jax.random.PRNGKey(0)
    k1, k2 = jax.random.split(key)

    # Small shapes consistent with the module (spatial_dims=2 ablation config).
    N, Cin, Cout, H, W = 2, 4, 8, 16, 16
    upsample_kernel_size = 2  # == upsample stride in the module

    x = jax.random.normal(k1, (N, Cin, H, W), dtype=jnp.float32)
    weight = (
        jax.random.normal(
            k2,
            (Cin, Cout, upsample_kernel_size, upsample_kernel_size),
            dtype=jnp.float32,
        )
        * 0.1
    )

    y = modified_unetr_pr_up_block_forward(x, weight, upsample_kernel_size)
    y = jax.block_until_ready(y)

    y_ref = _reference(x, weight)
    assert y.shape == (N, Cout, H * upsample_kernel_size, W * upsample_kernel_size)
    assert jnp.allclose(y, y_ref, atol=1e-5, rtol=1e-4)

    print("KERNEL_OK")
</pallas_src>

<mosaic_0001>
module attributes {stable_mosaic.version = 11 : i64} {
  func.func @_fused_upconv_kernel(%arg0: i32, %arg1: i32, %arg2: memref<1x4x8x16xf32, #tpu.memory_space<vmem>>, %arg3: memref<16x64xf32, #tpu.memory_space<vmem>>, %arg4: memref<4x8x1x64xf32, #tpu.memory_space<vmem>>, %arg5: memref<1x8x8x64xf32, #tpu.memory_space<vmem>>) attributes {dimension_semantics = [#tpu.dimension_semantics<parallel>, #tpu.dimension_semantics<parallel>], iteration_bounds = array<i64: 2, 2>, scalar_prefetch = 0 : i64, scratch_operands = 0 : i64, tpu.core_type = #tpu.core_type<tc>, window_params = [{transform_indices = @transform_0, window_bounds = array<i64: 1, 4, 8, 16>}, {pipeline_mode = #tpu.pipeline_mode<synchronous>, transform_indices = @transform_1, window_bounds = array<i64: 16, 64>}, {pipeline_mode = #tpu.pipeline_mode<synchronous>, transform_indices = @transform_2, window_bounds = array<i64: 4, 8, 1, 64>}, {transform_indices = @transform_3, window_bounds = array<i64: 1, 8, 8, 64>}]} {
    %c0 = arith.constant 0 : index
    %c0_0 = arith.constant 0 : index
    %0 = vector.load %arg3[%c0, %c0_0] : memref<16x64xf32, #tpu.memory_space<vmem>>, vector<16x64xf32>
    %c0_1 = arith.constant 0 : index
    %c0_2 = arith.constant 0 : index
    %c0_3 = arith.constant 0 : index
    %c0_4 = arith.constant 0 : index
    %1 = vector.load %arg2[%c0_1, %c0_2, %c0_3, %c0_4] : memref<1x4x8x16xf32, #tpu.memory_space<vmem>>, vector<1x1x8x16xf32>
    %2 = vector.shape_cast %1 : vector<1x1x8x16xf32> to vector<8x16xf32>
    %cst = arith.constant dense<0.000000e+00> : vector<8x64xf32>
    %3 = tpu.matmul %2, %0, %cst {dimension_numbers = #tpu.dot_dimension_numbers<[1], [0], [0], [1], [0, 0, 1, 1], [], []>} : vector<8x16xf32>, vector<16x64xf32>, vector<8x64xf32> -> vector<8x64xf32>
    %c0_5 = arith.constant 0 : index
    %c0_6 = arith.constant 0 : index
    %c0_7 = arith.constant 0 : index
    %c0_8 = arith.constant 0 : index
    %4 = vector.load %arg4[%c0_5, %c0_6, %c0_7, %c0_8] : memref<4x8x1x64xf32, #tpu.memory_space<vmem>>, vector<1x8x1x64xf32>
    %5 = vector.shape_cast %4 : vector<1x8x1x64xf32> to vector<8x1x64xf32>
    %6 = vector.shape_cast %3 : vector<8x64xf32> to vector<1x8x64xf32>
    %7 = vector.broadcast %5 : vector<8x1x64xf32> to vector<8x8x64xf32>
    %8 = vector.broadcast %6 : vector<1x8x64xf32> to vector<8x8x64xf32>
    %9 = arith.mulf %7, %8 : vector<8x8x64xf32>
    %c0_9 = arith.constant 0 : index
    %c1 = arith.constant 1 : index
    %c0_10 = arith.constant 0 : index
    %c0_11 = arith.constant 0 : index
    %10 = vector.load %arg2[%c0_9, %c1, %c0_10, %c0_11] : memref<1x4x8x16xf32, #tpu.memory_space<vmem>>, vector<1x1x8x16xf32>
    %11 = vector.shape_cast %10 : vector<1x1x8x16xf32> to vector<8x16xf32>
    %cst_12 = arith.constant dense<0.000000e+00> : vector<8x64xf32>
    %12 = tpu.matmul %11, %0, %cst_12 {dimension_numbers = #tpu.dot_dimension_numbers<[1], [0], [0], [1], [0, 0, 1, 1], [], []>} : vector<8x16xf32>, vector<16x64xf32>, vector<8x64xf32> -> vector<8x64xf32>
    %c1_13 = arith.constant 1 : index
    %c0_14 = arith.constant 0 : index
    %c0_15 = arith.constant 0 : index
    %c0_16 = arith.constant 0 : index
    %13 = vector.load %arg4[%c1_13, %c0_14, %c0_15, %c0_16] : memref<4x8x1x64xf32, #tpu.memory_space<vmem>>, vector<1x8x1x64xf32>
    %14 = vector.shape_cast %13 : vector<1x8x1x64xf32> to vector<8x1x64xf32>
    %15 = vector.shape_cast %12 : vector<8x64xf32> to vector<1x8x64xf32>
    %16 = vector.broadcast %14 : vector<8x1x64xf32> to vector<8x8x64xf32>
    %17 = vector.broadcast %15 : vector<1x8x64xf32> to vector<8x8x64xf32>
    %18 = arith.mulf %16, %17 : vector<8x8x64xf32>
    %19 = arith.addf %9, %18 : vector<8x8x64xf32>
    %c0_17 = arith.constant 0 : index
    %c2 = arith.constant 2 : index
    %c0_18 = arith.constant 0 : index
    %c0_19 = arith.constant 0 : index
    %20 = vector.load %arg2[%c0_17, %c2, %c0_18, %c0_19] : memref<1x4x8x16xf32, #tpu.memory_space<vmem>>, vector<1x1x8x16xf32>
    %21 = vector.shape_cast %20 : vector<1x1x8x16xf32> to vector<8x16xf32>
    %cst_20 = arith.constant dense<0.000000e+00> : vector<8x64xf32>
    %22 = tpu.matmul %21, %0, %cst_20 {dimension_numbers = #tpu.dot_dimension_numbers<[1], [0], [0], [1], [0, 0, 1, 1], [], []>} : vector<8x16xf32>, vector<16x64xf32>, vector<8x64xf32> -> vector<8x64xf32>
    %c2_21 = arith.constant 2 : index
    %c0_22 = arith.constant 0 : index
    %c0_23 = arith.constant 0 : index
    %c0_24 = arith.constant 0 : index
    %23 = vector.load %arg4[%c2_21, %c0_22, %c0_23, %c0_24] : memref<4x8x1x64xf32, #tpu.memory_space<vmem>>, vector<1x8x1x64xf32>
    %24 = vector.shape_cast %23 : vector<1x8x1x64xf32> to vector<8x1x64xf32>
    %25 = vector.shape_cast %22 : vector<8x64xf32> to vector<1x8x64xf32>
    %26 = vector.broadcast %24 : vector<8x1x64xf32> to vector<8x8x64xf32>
    %27 = vector.broadcast %25 : vector<1x8x64xf32> to vector<8x8x64xf32>
    %28 = arith.mulf %26, %27 : vector<8x8x64xf32>
    %29 = arith.addf %19, %28 : vector<8x8x64xf32>
    %c0_25 = arith.constant 0 : index
    %c3 = arith.constant 3 : index
    %c0_26 = arith.constant 0 : index
    %c0_27 = arith.constant 0 : index
    %30 = vector.load %arg2[%c0_25, %c3, %c0_26, %c0_27] : memref<1x4x8x16xf32, #tpu.memory_space<vmem>>, vector<1x1x8x16xf32>
    %31 = vector.shape_cast %30 : vector<1x1x8x16xf32> to vector<8x16xf32>
    %cst_28 = arith.constant dense<0.000000e+00> : vector<8x64xf32>
    %32 = tpu.matmul %31, %0, %cst_28 {dimension_numbers = #tpu.dot_dimension_numbers<[1], [0], [0], [1], [0, 0, 1, 1], [], []>} : vector<8x16xf32>, vector<16x64xf32>, vector<8x64xf32> -> vector<8x64xf32>
    %c3_29 = arith.constant 3 : index
    %c0_30 = arith.constant 0 : index
    %c0_31 = arith.constant 0 : index
    %c0_32 = arith.constant 0 : index
    %33 = vector.load %arg4[%c3_29, %c0_30, %c0_31, %c0_32] : memref<4x8x1x64xf32, #tpu.memory_space<vmem>>, vector<1x8x1x64xf32>
    %34 = vector.shape_cast %33 : vector<1x8x1x64xf32> to vector<8x1x64xf32>
    %35 = vector.shape_cast %32 : vector<8x64xf32> to vector<1x8x64xf32>
    %36 = vector.broadcast %34 : vector<8x1x64xf32> to vector<8x8x64xf32>
    %37 = vector.broadcast %35 : vector<1x8x64xf32> to vector<8x8x64xf32>
    %38 = arith.mulf %36, %37 : vector<8x8x64xf32>
    %39 = arith.addf %29, %38 : vector<8x8x64xf32>
    %c0_33 = arith.constant 0 : index
    %c0_34 = arith.constant 0 : index
    %c0_35 = arith.constant 0 : index
    %c0_36 = arith.constant 0 : index
    %40 = vector.load %arg5[%c0_33, %c0_34, %c0_35, %c0_36] : memref<1x8x8x64xf32, #tpu.memory_space<vmem>>, vector<1x8x8x64xf32>
    %41 = vector.shape_cast %40 : vector<1x8x8x64xf32> to vector<8x8x64xf32>
    %42 = vector.shape_cast %39 : vector<8x8x64xf32> to vector<1x8x8x64xf32>
    tpu.vector_store %arg5[%c0_33, %c0_34, %c0_35, %c0_36], %42 {strides = array<i32>} : memref<1x8x8x64xf32, #tpu.memory_space<vmem>>, vector<1x8x8x64xf32>,
    return
  }
  func.func @transform_0(%arg0: i32, %arg1: i32) -> (i32, i32, i32, i32) {
    %c0_i32 = arith.constant 0 : i32
    %c0_i32_0 = arith.constant 0 : i32
    %c0_i32_1 = arith.constant 0 : i32
    return %arg0, %c0_i32, %arg1, %c0_i32_0 : i32, i32, i32, i32
  }
  func.func @transform_1(%arg0: i32, %arg1: i32) -> (i32, i32) {
    %c0_i32 = arith.constant 0 : i32
    %c0_i32_0 = arith.constant 0 : i32
    %c0_i32_1 = arith.constant 0 : i32
    return %c0_i32, %c0_i32_0 : i32, i32
  }
  func.func @transform_2(%arg0: i32, %arg1: i32) -> (i32, i32, i32, i32) {
    %c0_i32 = arith.constant 0 : i32
    %c0_i32_0 = arith.constant 0 : i32
    %c0_i32_1 = arith.constant 0 : i32
    %c0_i32_2 = arith.constant 0 : i32
    %c0_i32_3 = arith.constant 0 : i32
    return %c0_i32, %c0_i32_0, %c0_i32_1, %c0_i32_2 : i32, i32, i32, i32
  }
  func.func @transform_3(%arg0: i32, %arg1: i32) -> (i32, i32, i32, i32) {
    %c0_i32 = arith.constant 0 : i32
    %c0_i32_0 = arith.constant 0 : i32
    %c0_i32_1 = arith.constant 0 : i32
    return %arg0, %c0_i32, %arg1, %c0_i32_0 : i32, i32, i32, i32
  }
}

</mosaic_0001>

<bundles_post_ra>
// kernel: tpu_custom_call.1
= control target key start
LH: loop header
LB: loop body
LE: loop exit
PB: predicated region body
PF: predicated region fallthrough
CT: control target
= control target key end

     0   :  { %s1701_s0 = inlined_call_operand.hbm [shape: f32[2,4,16,16], index: 0, kind: input, shape index: {}]   ;;  %s1702_s1 = inlined_call_operand.hbm [shape: f32[16,64], index: 1, kind: input, shape index: {}]   ;;  %s1703_s2 = inlined_call_operand.hbm [shape: f32[4,8,1,64], index: 2, kind: input, shape index: {}]   ;;  %s1704_s3 = inlined_call_operand.hbm [shape: f32[2,8,16,64], index: 3, kind: output, shape index: {}]  }
   0x1   :  { %1712 = sst [smem:[#allocation13_spill]] %s1702_s1 }
   0x2   :  { %8 = vsyncpa [#allocation3], 0 }
   0x3   :  { %10 = vsyncpa [#allocation3 + $0x1], 0 }
   0x4   :  { %11 = vsyncpa [#allocation6], 0 }
   0x5   :  { %12 = vsyncpa [#allocation4], 0 }
   0x6   :  { %14 = vsyncpa [#allocation4 + $0x1], 0  ;;  %s1396_s12 = smov 0   ;;  %s1398_s13 = smov 0  }
   0x7   :  { %s1400_s14 = smov 0   ;;  %s1402_s15 = smov 0  }
   0x8   :  { %s1404_s16 = smov 0   ;;  %s1406_s17 = smov 0  }
   0x9   :  { %s1408_s18 = smov 0   ;;  %s1410_s19 = smov 0  }
   0xa LB: > { %s951_s20 = sadd.s32 4294967295, %s1359_s19   ;;  %s952_s21 = sadd.s32 4294967294, %s1359_s19   ;;  %s1359_s19 = sphi %s1410_s19, %s20_s19   ;;  %s1355_s18 = sphi %s1408_s18, %s1738_s18   ;;  %s1351_s17 = sphi %s1406_s17, %s1737_s17   ;;  %s1347_s16 = sphi %s1404_s16, %s1736_s16   ;;  %s1343_s15 = sphi %s1402_s15, %s1735_s15   ;;  %s1339_s14 = sphi %s1400_s14, %s1734_s14   ;;  %s1335_s13 = sphi %s1398_s13, %s1733_s13   ;;  %s1331_s12 = sphi %s1396_s12, %s1732_s12  }
   0xb   : > { %p48_p0 = scmp.ne.s32.totalorder %s1339_s14, %s1335_s13  ;;  %p49_p1 = scmp.eq.s32.totalorder %s1359_s19, 0 }
   0xc   : > { %p54_p2 = scmp.ne.s32.totalorder %s1335_s13, %s1331_s12  ;;  %p1444_p3 = scmp.eq.s32.totalorder %s951_s20, 0 }
   0xd   : > { %p122_p4 = scmp.eq.s32.totalorder %s951_s20, 3  ;;  %p1448_p5 = por %p49_p1, %p48_p0 }
   0xe   : > { %s1713_s23 = scalar_select %p1444_p3, 1, 0 }
   0xf   : > { %p128_p6 = scmp.eq.s32.totalorder %s952_s21, 3  ;;  %p1454_p7 = por %p1444_p3, %p54_p2 }
  0x10   : > { %p1458_p8 = por %p122_p4, %p48_p0  ;;  %p953_p10 = scmp.ge.s32.totalorder %s1359_s19, 1 }
  0x11   : > { %s1715_s25 = scalar_select %p1454_p7, 1, 0 }
  0x12   : > { %s1716_s26 = scalar_select %p1458_p8, 1, 0 }
  0x13   : > { %p1462_p9 = por %p128_p6, %p54_p2  ;;  %p135_p11 = scmp.lt.s32.totalorder %s1359_s19, 5 }
  0x14   : > { %s1361_s29 = smov [#allocation5]   ;;  %p1090_p0 = scmp.lt.s32.totalorder %s1359_s19, 4 }
  0x15   : > { %s1717_s27 = scalar_select %p1462_p9, 1, 0 }
  0x16   : > { %p1468_p12 = pnand %p953_p10, %p135_p11  ;;  %s147_s30 = sshll.u32 %s1361_s29, 4  ;;  %s1472_s30 = int_to_ptr.vmem [resolvable:$true] %s147_s30 }
  0x17   : > { %1718 = sst [smem:[#allocation12_spill]] %s1717_s27  ;;  %s1362_s5 = smov [#allocation7]  }
  0x18   : > { %p1073_p13 = pneg %p1468_p12  ;;  %s160_s6 = sshll.u32 %s1362_s5, 4  ;;  %s1489_s6 = int_to_ptr.vmem [resolvable:$true] %s160_s6 }
  0x19   : > { %p1485_p2 = pnand %p1090_p0, %p1448_p5  ;;  %s1722_s1 = sld [smem:[#allocation13_spill]] }
  0x1a   : > { %p1479_p1 = pnand %p1073_p13, %p1444_p3 }
  0x1c   : > { %p1173_p6 = pneg %p1479_p1 }
  0x1f   : > { %s1171_s10 = scalar_lea.hbm %s1722_s1, 256 }
  0x20   : > { %p1172_p4 = scmp.ne.s32.totalorder %s1722_s1, %s1171_s10  ;;  %p1178_p5 = scmp.lt.u32.totalorder %s1171_s10, %s1722_s1 }
  0x22   : > { %p1174_p10 = pnand %p1173_p6, %p1172_p4 }
  0x24   : > { %p1175_p11 = pneg %p1174_p10 }
  0x26   : > { %p1180_p13 = pnand %p1178_p5, %p1175_p11 }
  0x28   : > { %1183 = shalt.err (!%p1180_p13)
}
  0x29   : > { %s1184_s29 = scalar_lea.vmem %s1472_s30, 256  ;;  %p1192_p3 = scmp.lt.s32.totalorder %s1472_s30, %s1472_s30 }
  0x2a   : > { %p1185_p0 = scmp.ne.s32.totalorder %s1472_s30, %s1184_s29  ;;  %p1193_p4 = scmp.lt.s32.totalorder %s1184_s29, %s1184_s29 }
  0x2c   : > { %p1187_p9 = pnand %p1185_p0, %p1173_p6  ;;  %p1194_p10 = por %p1193_p4, %p1192_p3 }
  0x2e   : > { %p1188_p8 = pneg %p1187_p9 }
  0x30   : > { %p1195_p7 = pnand %p1194_p10, %p1188_p8 }
  0x32   : > { %1198 = shalt.err (!%p1195_p7)
}
  0x33   : > { %s1710_s5 = smov 128   ;;  %s1711_s8 = smov 8  }
  0x34   : > { %1076 = dma.hbm_to_vmem [thread:$0]  (!%p1479_p1), %s1722_s1, 256, %s1472_s30, [#allocation6], %s1710_s5, %s1710_s5, %s1711_s8  }
  0x35   : > { %s1199_s21 = scalar_lea.hbm %s1703_s2, 512 }
  0x36   : > { %p1200_p3 = scmp.ne.s32.totalorder %s1703_s2, %s1199_s21  ;;  %p1206_p9 = scmp.lt.u32.totalorder %s1199_s21, %s1703_s2 }
  0x38   : > { %p1202_p7 = pnand %p1200_p3, %p1173_p6 }
  0x3a   : > { %p1203_p8 = pneg %p1202_p7 }
  0x3c   : > { %p1208_p11 = pnand %p1206_p9, %p1203_p8 }
  0x3e   : > { %1211 = shalt.err (!%p1208_p11)
}
  0x3f   : > { %s1212_s30 = scalar_lea.vmem %s1489_s6, 512  ;;  %p1220_p4 = scmp.lt.s32.totalorder %s1489_s6, %s1489_s6 }
  0x40   : > { %p1213_p5 = scmp.ne.s32.totalorder %s1489_s6, %s1212_s30  ;;  %p1221_p10 = scmp.lt.s32.totalorder %s1212_s30, %s1212_s30 }
  0x42   : > { %p1215_p13 = pnand %p1213_p5, %p1173_p6  ;;  %p1222_p3 = por %p1221_p10, %p1220_p4 }
  0x44   : > { %p1216_p0 = pneg %p1215_p13 }
  0x46   : > { %p1223_p7 = pnand %p1222_p3, %p1216_p0 }
  0x48   : > { %1226 = shalt.err (!%p1223_p7)
}
  0x49   : > { %s1365_s22 = smov 16   ;;  %s1366_s27 = smov 1  }
  0x4a   : > { %1079 = dma.hbm_to_vmem [thread:$0]  (!%p1479_p1), %s1703_s2, 512, %s1489_s6, [#allocation6], %s1365_s22, %s1365_s22, %s1366_s27  }
  0x4b   : > { %s29_s11 = sadd.s32 1, %s1351_s17  ;;  %s32_s20 = sadd.s32 1, %s1355_s18 }
  0x4c   : > { %p30_p6 = scmp.ge.s32.totalorder %s29_s11, 2  ;;  %s174_s21 = sand.u32 1, %s1339_s14  }
  0x4d   : > { %s957_s24 = sshll.u32 %s174_s21, 5  ;;  %s958_s30 = sshll.u32 %s1355_s18, 3 }
  0x4e   : > { %s1740_s11 = smov (%p30_p6, %s29_s11), 0  ;;  %s1742_s20 = smov (!%p30_p6, %s32_s20), %s1355_s18 }
  0x4f   : > { %s37_s29 = ssub.s32 %s1351_s17, %s1740_s11  ;;  %p34_p8 = scmp.ge.s32.totalorder %s1742_s20, 2 }
  0x50   : > { %s183_s4 = sadd.s32 %s1351_s17, %s958_s30  ;;  %s178_s5 = scalar_lea.vmem [#allocation2], %s957_s24 }
  0x51   : > { %s186_s8 = sshll.u32 %s178_s5, 4  ;;  %s1744_s20 = smov (%p34_p8, %s1742_s20), 0  ;;  %s1558_s8 = int_to_ptr.vmem [resolvable:$true] %s186_s8 }
  0x52   : > { %s959_s6 = sshll.u32 %s183_s4, 7  ;;  %s36_s22 = ssub.s32 %s1355_s18, %s1744_s20 }
  0x53   : > { %s1565_s10 = scalar_lea.hbm %s1701_s0, %s959_s6  ;;  %s1567_s1 = sor.u32 %s37_s29, %s36_s22 }
  0x54   : > { %s1570_s5 = scalar_lea.sflag [#allocation3], %s174_s21  ;;  %s1227_s24 = scalar_lea.hbm %s1565_s10, 512 }
  0x55   : > { %p1228_p9 = scmp.ne.s32.totalorder %s1565_s10, %s1227_s24  ;;  %p1229_p11 = pneg %p1485_p2 }
  0x56   : > { %s1232_s6 = scalar_lea.hbm %s1701_s0, 2048  ;;  %p1233_p0 = scmp.lt.u32.totalorder %s1565_s10, %s1701_s0 }
  0x57   : > { %p1230_p5 = pnand %p1229_p11, %p1228_p9  ;;  %p1234_p4 = scmp.lt.u32.totalorder %s1232_s6, %s1227_s24 }
  0x58   : > { %p1236_p3 = scmp.lt.u32.totalorder %s1227_s24, %s1565_s10 }
  0x59   : > { %p1231_p13 = pneg %p1230_p5  ;;  %p1235_p10 = por %p1234_p4, %p1233_p0 }
  0x5b   : > { %p1237_p7 = por %p1236_p3, %p1235_p10 }
  0x5d   : > { %p1238_p6 = pnand %p1237_p7, %p1231_p13 }
  0x5f   : > { %1241 = shalt.err (!%p1238_p6)
}
  0x60   : > { %s1242_s21 = scalar_lea.vmem %s1558_s8, 512  ;;  %s1367_s29 = smov [#allocation2]  }
  0x61   : > { %p1243_p8 = scmp.ne.s32.totalorder %s1558_s8, %s1242_s21  ;;  %s1247_s22 = sshll.u32 %s1367_s29, 4  ;;  %s1248_s22 = int_to_ptr.vmem [resolvable:$false] %s1247_s22 }
  0x62   : > { %s1249_s30 = scalar_lea.vmem %s1248_s22, 1024  ;;  %p1250_p1 = scmp.lt.s32.totalorder %s1558_s8, %s1248_s22 }
  0x63   : > { %p1245_p9 = pnand %p1243_p8, %p1229_p11  ;;  %p1251_p0 = scmp.lt.s32.totalorder %s1249_s30, %s1242_s21 }
  0x65   : > { %p1246_p5 = pneg %p1245_p9  ;;  %p1252_p4 = por %p1251_p0, %p1250_p1 }
  0x67   : > { %p1253_p10 = pnand %p1252_p4, %p1246_p5 }
  0x69   : > { %1256 = shalt.err (!%p1253_p10)
}
  0x6a   : > { %s1368_s24 = smov 256   ;;  %s1723_s4 = smov 8  }
  0x6b   : > { %s1724_s6 = smov 128   ;;  %s1725_s27 = sadd.s32 1, %s1339_s14 }
  0x6c   : > { %1083 = dma.hbm_to_vmem [thread:$0]  (!%p1485_p2), %s1565_s10, 512, %s1558_s8, %s1570_s5, %s1368_s24, %s1724_s6, %s1723_s4  }
  0x6d   : > { %p1726_p11 = scmp.eq.s32.totalorder %s1567_s1, 0  ;;  %198 = sbr.rel (%p1468_p12) target bundleno = 372 (0x174), region = 32 }
  0x6e   : > { %s1610_s21 = sand.u32 (!%p1468_p12), 1, %s1335_s13   ;;  %p1727_p1 = scmp.ne.s32.totalorder (!%p1468_p12), %s1715_s25, 0 }
  0x6f   : > { %s1605_s9 = scalar_select %p1726_p11, %s1339_s14, %s1725_s27  }
  0x70   : > { %s961_s7 = sshll.u32 (!%p1468_p12), %s1610_s21, 5  ;;  %s201_s29 = scalar_lea.sflag (!%p1468_p12), [#allocation3], %s1610_s21 }
  0x71   : > { %s204_s22 = scalar_lea.vmem (!%p1468_p12), [#allocation2], %s961_s7 }
  0x74   : > { %1318 = dma.done.wait (%p1727_p1), %s201_s29, 512  }
  0x75   : > { %1320 = vsyncadd (%p1727_p1), %s201_s29, 4294966784  ;;  %p1728_p2 = scmp.ne.s32.totalorder %s1713_s23, 0 }
  0x77   : > { %1322 = dma.done.wait (%p1728_p2), [#allocation6], 768  }
  0x78   : > { %1324 = vsyncadd (%p1728_p2), [#allocation6], 4294966528  ;;  %v1369_v0 = vmov 0.0|0.0   ;;  %vm1370_vm0 = vmmov 0   ;;  %v1371_v1 = vmov 0.0   ;;  %v235_v2 = vld [vmem:[#allocation5] sm:$0xff] }
  0x79   : > { %1049 = vmatprep.subr.bf16.mxu0 %v1369_v0  ;;  %1052 = vmatprep.subr.bf16.mxu1 %v1369_v0  ;;  %v236_v3 = vld [vmem:[#allocation5 + $0x8] sm:$0xff]  ;;  %v237_v5 = vld [vmem:[%s204_s22] sm:$0xff]  ;;  %vm238_vm1 = vcmask 130048   ;;  %v984_v7 = vld [vmem:[%s204_s22 + $0x10] sm:$0xff]  ;;  %s1005_s1 = sshll.u32 %s1347_s16, 4  ;;  %s964_s23 = sshll.u32 %s1610_s21, 6 }
  0x7a   : > { %1025 = vmatprep.mubr.msk.f32.mxu0 %vm1370_vm0, %v1371_v1  ;;  %1032 = vmatprep.mubr.msk.f32.mxu1 %vm1370_vm0, %v1371_v1  ;;  %v1050_v4 = vpack.c.bf16 %v236_v3, %v235_v2  ;;  %v974_v6 = vld [vmem:[%s204_s22 + $0x8] sm:$0xff]  ;;  %v994_v8 = vld [vmem:[%s204_s22 + $0x18] sm:$0xff]  ;;  %v966_v9 = vld [vmem:[#allocation7] ss:$0 sm:$0xff]  ;;  %vm820_vm2 = vcmask 523264   ;;  %s1629_s16 = sadd.s32 %s1343_s15, %s1005_s1  ;;  %s234_s25 = scalar_lea.vmem [#allocation8], %s964_s23 }
  0x7b   : > { %v967_v10 = vld [vmem:[#allocation7 + $0x1] ss:$0 sm:$0xff]  ;;  %v968_v11 = vld [vmem:[#allocation7 + $0x2] ss:$0 sm:$0xff]  ;;  %v969_v12 = vld [vmem:[#allocation7 + $0x3] ss:$0 sm:$0xff] }
  0x7c   : > { %1051 = vmatpush3.bf16.msra.mxu0 %v1050_v4  ;;  %1054 = vmatpush3.bf16.msra.mxu1 %v1050_v4  ;;  %v970_v13 = vld [vmem:[#allocation7 + $0x4] ss:$0 sm:$0xff]  ;;  %v971_v14 = vld [vmem:[#allocation7 + $0x5] ss:$0 sm:$0xff]  ;;  %v972_v15 = vld [vmem:[#allocation7 + $0x6] ss:$0 sm:$0xff] }
  0x7d   : > { %1055 = vmatprep.subr.bf16.mxu0 %v1369_v0  ;;  %1058 = vmatprep.subr.bf16.mxu1 %v1369_v0  ;;  %v973_v16 = vld [vmem:[#allocation7 + $0x7] ss:$0 sm:$0xff]  ;;  %v976_v17 = vld [vmem:[#allocation7 + $0x8] ss:$0 sm:$0xff]  ;;  %v977_v18 = vld [vmem:[#allocation7 + $0x9] ss:$0 sm:$0xff] }
  0x7e   : > { %v978_v19 = vld [vmem:[#allocation7 + $0xa] ss:$0 sm:$0xff]  ;;  %v979_v20 = vld [vmem:[#allocation7 + $0xb] ss:$0 sm:$0xff]  ;;  %v980_v23 = vld [vmem:[#allocation7 + $0xc] ss:$0 sm:$0xff] }
  0x7f   : > { %1026 = vmatmul.mubr.msk.f32.vlgmr.msra.gmra.mrb[0].mxu0 %vm238_vm1, %v237_v5  ;;  %1033 = vmatmul.mubr.msk.f32.vlgmr.msra.gmra.mrb[0].mxu1 %vm238_vm1, %v974_v6  ;;  %v981_v24 = vld [vmem:[#allocation7 + $0xd] ss:$0 sm:$0xff]  ;;  %v982_v30 = vld [vmem:[#allocation7 + $0xe] ss:$0 sm:$0xff]  ;;  %v983_v31 = vld [vmem:[#allocation7 + $0xf] ss:$0 sm:$0xff] }
  0x80   : > { %1057 = vmatpush3.bf16.msra.mxu0 %v1050_v4  ;;  %1039 = vmatprep.mubr.msk.f32.mxu0 %vm1370_vm0, %v1371_v1  ;;  %v986_v37 = vld [vmem:[#allocation7 + $0x10] ss:$0 sm:$0xff]  ;;  %v987_v38 = vld [vmem:[#allocation7 + $0x11] ss:$0 sm:$0xff]  ;;  %v988_v43 = vld [vmem:[#allocation7 + $0x12] ss:$0 sm:$0xff] }
  0x81   : > { %1060 = vmatpush3.bf16.msra.mxu1 %v1050_v4  ;;  %1046 = vmatprep.mubr.msk.f32.mxu1 %vm1370_vm0, %v1371_v1  ;;  %v989_v44 = vld [vmem:[#allocation7 + $0x13] ss:$0 sm:$0xff]  ;;  %v990_v50 = vld [vmem:[#allocation7 + $0x14] ss:$0 sm:$0xff]  ;;  %v991_v51 = vld [vmem:[#allocation7 + $0x15] ss:$0 sm:$0xff] }
  0x82   : > { %v992_v56 = vld [vmem:[#allocation7 + $0x16] ss:$0 sm:$0xff]  ;;  %v993_v57 = vld [vmem:[#allocation7 + $0x17] ss:$0 sm:$0xff]  ;;  %v996_v0 = vld [vmem:[#allocation7 + $0x18] ss:$0 sm:$0xff] }
  0x83   : > { %1040 = vmatmul.mubr.msk.f32.vlgmr.msra.gmra.mrb[2].mxu0 %vm238_vm1, %v984_v7  ;;  %v997_v6 = vld [vmem:[#allocation7 + $0x19] ss:$0 sm:$0xff]  ;;  %v998_v7 = vld [vmem:[#allocation7 + $0x1a] ss:$0 sm:$0xff]  ;;  %s1006_s15 = sshll.u32 %s1629_s16, 7  ;;  %s844_s28 = sshll.u32 %s234_s25, 4  ;;  %s1639_s28 = int_to_ptr.vmem [resolvable:$true] %s844_s28 }
  0x84   : > { %1047 = vmatmul.mubr.msk.f32.vlgmr.msra.gmra.mrb[2].mxu1 %vm238_vm1, %v994_v8  ;;  %s1637_s5 = scalar_lea.hbm %s1704_s3, %s1006_s15  ;;  %s830_s30 = scalar_lea.sflag [#allocation4], %s1610_s21 }
  0x85   : > { %s1257_s24 = scalar_lea.vmem %s1639_s28, 1024  ;;  %p1729_p13 = scmp.ne.s32.totalorder %s1716_s26, 0 }
  0x86   : > { %p1258_p12 = scmp.ne.s32.totalorder %s1639_s28, %s1257_s24  ;;  %s1372_s4 = smov [#allocation8]  }
  0x87   : > { %s1261_s6 = sshll.u32 %s1372_s4, 4  ;;  %s1262_s6 = int_to_ptr.vmem [resolvable:$false] %s1261_s6 }
  0x88   : > { %p1259_p3 = pnand %p1258_p12, %p1729_p13  ;;  %s1263_s27 = scalar_lea.vmem %s1262_s6, 2048 }
  0x89   : > { %p1264_p6 = scmp.lt.s32.totalorder %s1639_s28, %s1262_s6  ;;  %p1265_p8 = scmp.lt.s32.totalorder %s1263_s27, %s1257_s24 }
  0x8a   : > { %p1260_p7 = pneg %p1259_p3 }
  0x8b   : > { %p1266_p9 = por %p1265_p8, %p1264_p6 }
  0x8d   : > { %p1267_p5 = pnand %p1266_p9, %p1260_p7 }
 0x152   : > { %v308_v21 = vpop.f32.mrb[0].mxu0  ;;  %v447_v22 = vpop.f32.mrb[0].mxu1 }
 0x153   : > { %v368_v25 = vmul.f32 %v966_v9, %v308_v21  ;;  %v369_v26 = vmul.f32 %v967_v10, %v308_v21  ;;  %v370_v27 = vmul.f32 %v968_v11, %v308_v21  ;;  %v371_v28 = vmul.f32 %v969_v12, %v308_v21  ;;  %v1027_v29 = vpop.f32.mrb[1].mxu0  ;;  %v1034_v32 = vpop.f32.mrb[1].mxu1  ;;  %v999_v12 = vld [vmem:[#allocation7 + $0x1b] ss:$0 sm:$0xff] }
 0x154   : > { %v372_v33 = vmul.f32 %v970_v13, %v308_v21  ;;  %v373_v34 = vmul.f32 %v971_v14, %v308_v21  ;;  %v374_v35 = vmul.f32 %v972_v15, %v308_v21  ;;  %v375_v36 = vmul.f32 %v973_v16, %v308_v21  ;;  %v1000_v13 = vld [vmem:[#allocation7 + $0x1c] ss:$0 sm:$0xff]  ;;  %v1001_v14 = vld [vmem:[#allocation7 + $0x1d] ss:$0 sm:$0xff] }
 0x155   : > { %v508_v39 = vmul.f32 %v976_v17, %v447_v22  ;;  %v509_v40 = vmul.f32 %v977_v18, %v447_v22  ;;  %v510_v41 = vmul.f32 %v978_v19, %v447_v22  ;;  %v511_v42 = vmul.f32 %v979_v20, %v447_v22  ;;  %v1002_v19 = vld [vmem:[#allocation7 + $0x1e] ss:$0 sm:$0xff]  ;;  %v1003_v20 = vld [vmem:[#allocation7 + $0x1f] ss:$0 sm:$0xff] }
 0x156   : > { %v512_v45 = vmul.f32 %v980_v23, %v447_v22  ;;  %v513_v46 = vmul.f32 %v981_v24, %v447_v22  ;;  %v514_v47 = vmul.f32 %v982_v30, %v447_v22  ;;  %v515_v48 = vmul.f32 %v983_v31, %v447_v22  ;;  %v595_v49 = vpop.f32.mrb[2].mxu0 }
 0x157   : > { %v516_v52 = vadd.f32 %v508_v39, %v368_v25  ;;  %v517_v53 = vadd.f32 %v509_v40, %v369_v26  ;;  %v518_v54 = vadd.f32 %v510_v41, %v370_v27  ;;  %v519_v55 = vadd.f32 %v511_v42, %v371_v28  ;;  %v1041_v58 = vpop.f32.mrb[3].mxu0  ;;  %v743_v59 = vpop.f32.mrb[2].mxu1 }
 0x158   : > { %v520_v60 = vadd.f32 %v512_v45, %v372_v33  ;;  %v521_v61 = vadd.f32 %v513_v46, %v373_v34  ;;  %v522_v62 = vadd.f32 %v514_v47, %v374_v35  ;;  %v523_v63 = vadd.f32 %v515_v48, %v375_v36  ;;  %v1048_v1 = vpop.f32.mrb[3].mxu1 }
 0x159   : > { %v656_v2 = vmul.f32 %v986_v37, %v595_v49  ;;  %v657_v3 = vmul.f32 %v987_v38, %v595_v49  ;;  %v658_v4 = vmul.f32 %v988_v43, %v595_v49  ;;  %v659_v5 = vmul.f32 %v989_v44, %v595_v49 }
 0x15a   : > { %v660_v8 = vmul.f32 %v990_v50, %v595_v49  ;;  %v661_v9 = vmul.f32 %v991_v51, %v595_v49  ;;  %v662_v10 = vmul.f32 %v992_v56, %v595_v49  ;;  %v663_v11 = vmul.f32 %v993_v57, %v595_v49 }
 0x15b   : > { %v664_v15 = vadd.f32 %v656_v2, %v516_v52  ;;  %v665_v16 = vadd.f32 %v657_v3, %v517_v53  ;;  %v666_v17 = vadd.f32 %v658_v4, %v518_v54  ;;  %v667_v18 = vadd.f32 %v659_v5, %v519_v55 }
 0x15c   : > { %v668_v21 = vadd.f32 %v660_v8, %v520_v60  ;;  %v669_v22 = vadd.f32 %v661_v9, %v521_v61  ;;  %v670_v23 = vadd.f32 %v662_v10, %v522_v62  ;;  %v671_v24 = vadd.f32 %v663_v11, %v523_v63 }
 0x15d   : > { %v804_v25 = vmul.f32 %v996_v0, %v743_v59  ;;  %v805_v26 = vmul.f32 %v997_v6, %v743_v59  ;;  %v806_v27 = vmul.f32 %v998_v7, %v743_v59  ;;  %v807_v28 = vmul.f32 %v999_v12, %v743_v59 }
 0x15e   : > { %v808_v29 = vmul.f32 %v1000_v13, %v743_v59  ;;  %v809_v30 = vmul.f32 %v1001_v14, %v743_v59  ;;  %v810_v31 = vmul.f32 %v1002_v19, %v743_v59  ;;  %v811_v32 = vmul.f32 %v1003_v20, %v743_v59 }
 0x15f   : > { %v812_v33 = vadd.f32 %v804_v25, %v664_v15  ;;  %v813_v34 = vadd.f32 %v805_v26, %v665_v16  ;;  %v814_v35 = vadd.f32 %v806_v27, %v666_v17  ;;  %v815_v36 = vadd.f32 %v807_v28, %v667_v18 }
 0x160   : > { %v816_v37 = vadd.f32 %v808_v29, %v668_v21  ;;  %v817_v38 = vadd.f32 %v809_v30, %v669_v22  ;;  %v818_v39 = vadd.f32 %v810_v31, %v670_v23  ;;  %v819_v40 = vadd.f32 %v811_v32, %v671_v24 }
 0x161   : > { %821 = vst.msk [vmem:[%s234_s25] sm:$0xff] %vm820_vm2, %v812_v33  ;;  %822 = vst.msk [vmem:[%s234_s25 + $0x8] sm:$0xff] %vm820_vm2, %v813_v34 }
 0x162   : > { %823 = vst.msk [vmem:[%s234_s25 + $0x10] sm:$0xff] %vm820_vm2, %v814_v35  ;;  %824 = vst.msk [vmem:[%s234_s25 + $0x18] sm:$0xff] %vm820_vm2, %v815_v36 }
 0x163   : > { %825 = vst.msk [vmem:[%s234_s25 + $0x20] sm:$0xff] %vm820_vm2, %v816_v37  ;;  %826 = vst.msk [vmem:[%s234_s25 + $0x28] sm:$0xff] %vm820_vm2, %v817_v38 }
 0x164   : > { %827 = vst.msk [vmem:[%s234_s25 + $0x30] sm:$0xff] %vm820_vm2, %v818_v39  ;;  %828 = vst.msk [vmem:[%s234_s25 + $0x38] sm:$0xff] %vm820_vm2, %v819_v40 }
 0x165   : > { %1270 = shalt.err (!%p1267_p5)
}
 0x166   : > { %s1271_s7 = scalar_lea.hbm %s1637_s5, 1024  ;;  %s1275_s1 = scalar_lea.hbm %s1704_s3, 4096 }
 0x167   : > { %p1272_p0 = scmp.ne.s32.totalorder %s1637_s5, %s1271_s7  ;;  %p1276_p11 = scmp.lt.u32.totalorder %s1637_s5, %s1704_s3 }
 0x168   : > { %p1277_p1 = scmp.lt.u32.totalorder %s1275_s1, %s1271_s7  ;;  %p1279_p12 = scmp.lt.u32.totalorder %s1271_s7, %s1637_s5 }
 0x169   : > { %p1273_p4 = pnand %p1272_p0, %p1729_p13 }
 0x16a   : > { %p1278_p2 = por %p1277_p1, %p1276_p11 }
 0x16b   : > { %p1274_p10 = pneg %p1273_p4 }
 0x16c   : > { %p1280_p3 = por %p1279_p12, %p1278_p2 }
 0x16e   : > { %p1281_p7 = pnand %p1280_p3, %p1274_p10 }
 0x170   : > { %1284 = shalt.err (!%p1281_p7)
}
 0x171   : > { %s1373_s15 = smov 128   ;;  %s1374_s25 = smov 256  }
 0x172   : > { %s1375_s8 = smov 8  }
 0x173   : > { %1071 = dma.vmem_to_hbm [thread:$0]  (%p1729_p13), %s1639_s28, 1024, %s1637_s5, %s830_s30, %s1373_s15, %s1374_s25, %s1375_s8  }
 0x174 PF: > { %s1730_s10 = sld [smem:[#allocation12_spill]]  ;;  %p1093_p6 = scmp.ge.s32.totalorder %s1359_s19, 2 }
 0x175   : > { %s859_s24 = sand.u32 1, %s1331_s12  }
 0x176   : > { %s860_s4 = scalar_lea.sflag [#allocation4], %s859_s24 }
 0x17a   : > { %p1731_p8 = scmp.ne.s32.totalorder %s1730_s10, 0 }
 0x17c   : > { %p1085_p9 = pnand %p1093_p6, %p1731_p8 }
 0x17e   : > { %1326 = dma.done.wait (!%p1085_p9), %s860_s4, 1024  }
 0x17f   : > { %1328 = vsyncadd (!%p1085_p9), %s860_s4, 4294966272  ;;  %s20_s19 = sadd.s32 1, %s1359_s19   ;;  %s1732_s12 = smov %s1335_s13 }
 0x180   : > { %p17_p5 = scmp.ge.s32.totalorder %s20_s19, 6   ;;  %s1733_s13 = smov %s1339_s14 }
 0x181   : > { %s1734_s14 = smov %s1605_s9  ;;  %s1735_s15 = smov %s1351_s17 }
 0x182   : > { %s1736_s16 = smov %s1355_s18  ;;  %s1737_s17 = smov %s1740_s11 }
 0x183   : > { %s1738_s18 = smov %s1744_s20  ;;  %19 = sbr.rel (!%p17_p5) target bundleno = 10 (0xa), region = 91 }
 0x18a   :  { %865 = vsyncpa [#allocation3], 1 }
 0x18b   :  { %867 = vsyncpa [#allocation3 + $0x1], 1 }
 0x18c   :  { %868 = vsyncpa [#allocation6], 1 }
 0x18d   :  { %869 = vsyncpa [#allocation4], 1 }
 0x18e   :  { %871 = vsyncpa [#allocation4 + $0x1], 1 }

</bundles_post_ra>
